<compile_context>
chip_gen: v5e
topology: v5e:2x2
jax: 0.10.0
libtpu: 0.0.40
codegen_flags: <defaults>
</compile_context>

<pallas_src>
import jax
import jax.numpy as jnp
import numpy as np
from jax.experimental import pallas as pl
from jax.experimental.pallas import tpu as pltpu


def feature_nn_kernel(x_ref, s_ref, c0_ref, w1t_ref, c1_ref, w2t_ref, c2_ref,
                      wlin_ref, o_ref):
    xb = x_ref[...]                                            # (1, TB) lane-dense tile

    # --- ExU shallow layer, rank-1 rewrite (pure VPU, no MXU) ---
    #   (x - b0) @ exp(W0) == x * colsum(exp(W0)) - b0 @ exp(W0)
    h = jnp.clip(s_ref[...] * xb - c0_ref[...], 0.0, 1.0)      # (S, TB)

    # --- hidden ReLU layer 1 (bias folded):  relu(W1^T @ h - (b1 @ W1)^T) ---
    h = jnp.maximum(
        jnp.dot(w1t_ref[...], h, preferred_element_type=jnp.float32)
        - c1_ref[...], 0.0)                                    # (H1, TB)

    # --- hidden ReLU layer 2 (bias folded) ---
    h = jnp.maximum(
        jnp.dot(w2t_ref[...], h, preferred_element_type=jnp.float32)
        - c2_ref[...], 0.0)                                    # (H2, TB)

    # --- final Linear(H2 -> 1, no bias): VPU mul + sublane reduce (MXU stays free,
    #     output block stays lane-dense) ---
    o_ref[...] = jnp.sum(h * wlin_ref[...], axis=0, keepdims=True)   # (1, TB)


def _round_up(n, m):
    return ((n + m - 1) // m) * m


def _resident_spec(a):
    # Full-array block with a constant index map -> fetched once, resident in VMEM.
    return pl.BlockSpec(a.shape, lambda i: (0,) * a.ndim)


def feature_nn(x, b0, w0, b1, w1, b2, w2, wlin, *, batch_tile=1024):
    """x: (B, 1); weights as in the torch module (W: (in, out), b: (1, in)); returns (B, 1)."""
    B = x.shape[0]
    S = w0.shape[0]
    H1 = w1.shape[1]
    H2 = w2.shape[1]

    # ---- weight-only precomputation (hoisted out of the kernel; tiny, constant-folded
    #      / cached across calls under jit since it depends only on the parameters) ----
    expw0 = jnp.exp(w0.astype(jnp.float32))                    # (S, S)
    s_col = jnp.sum(expw0, axis=0).reshape(S, 1)               # colsum(exp(W0))   (S, 1)
    c0_col = (b0.astype(jnp.float32) @ expw0).reshape(S, 1)    # b0 @ exp(W0)      (S, 1)
    w1t = w1.astype(jnp.float32).T                             # (H1, S)
    c1_col = (b1.astype(jnp.float32) @ w1).reshape(H1, 1)      # b1 @ W1           (H1, 1)
    w2t = w2.astype(jnp.float32).T                             # (H2, H1)
    c2_col = (b2.astype(jnp.float32) @ w2).reshape(H2, 1)      # b2 @ W2           (H2, 1)
    wlin_col = wlin.astype(jnp.float32).reshape(H2, 1)         # (H2, 1)

    # ---- batch on the lane axis, tiled and padded to a 128-multiple tile ----
    tb = min(batch_tile, _round_up(B, 128))                    # multiple of 128
    bp = _round_up(B, tb)
    x_row = jnp.pad(x.reshape(1, B).astype(jnp.float32), ((0, 0), (0, bp - B)))

    grid = (bp // tb,)

    # Advisory cost for XLA's scheduler (exp is precomputed -> no transcendentals).
    flops = 2 * B * (S + S * H1 + H1 * H2 + H2)
    bytes_accessed = 4 * (2 * B + 2 * S + H1 * (S + 1) + H2 * (H1 + 2))
    cost = pl.CostEstimate(flops=flops, transcendentals=0,
                           bytes_accessed=bytes_accessed)

    out_row = pl.pallas_call(
        feature_nn_kernel,
        out_shape=jax.ShapeDtypeStruct((1, bp), jnp.float32),
        grid=grid,
        in_specs=[
            pl.BlockSpec((1, tb), lambda i: (0, i)),           # x batch tile (lane-dense)
            _resident_spec(s_col),
            _resident_spec(c0_col),
            _resident_spec(w1t),
            _resident_spec(c1_col),
            _resident_spec(w2t),
            _resident_spec(c2_col),
            _resident_spec(wlin_col),
        ],
        out_specs=pl.BlockSpec((1, tb), lambda i: (0, i)),     # lane-dense output tile
        compiler_params=pltpu.CompilerParams(
            dimension_semantics=("parallel",)),                # megacore-shardable
        cost_estimate=cost,
    )(x_row, s_col, c0_col, w1t, c1_col, w2t, c2_col, wlin_col)

    return out_row[0, :B].reshape(B, 1)


# ---------------------------------------------------------------------------
# deterministic init helpers (stand-ins for the torch initializers)
# ---------------------------------------------------------------------------
def _trunc_normal(key, shape, mean=0.0, std=1.0):
    return mean + std * jax.random.truncated_normal(key, -2.0, 2.0, shape,
                                                    jnp.float32)


def _xavier_uniform(key, shape):
    fan_in, fan_out = shape
    limit = (6.0 / (fan_in + fan_out)) ** 0.5
    return jax.random.uniform(key, shape, jnp.float32, -limit, limit)


def _reference_f64(x, b0, w0, b1, w1, b2, w2, wlin):
    # Original (un-reassociated) formulation, evaluated in float64 as ground truth.
    x, b0, w0, b1, w1, b2, w2, wlin = (np.asarray(a, np.float64)
                                       for a in (x, b0, w0, b1, w1, b2, w2, wlin))
    h = np.clip((x - b0) @ np.exp(w0), 0.0, 1.0)
    h = np.maximum((h - b1) @ w1, 0.0)
    h = np.maximum((h - b2) @ w2, 0.0)
    return h @ wlin


if __name__ == "__main__":
    # FeatureNN(shallow_units=32, hidden_units=(64, 32)); per-feature scalar input.
    # B=650 with batch_tile=256 exercises the batch grid (3 steps) AND the pad/slice path.
    S, H1, H2, B = 32, 64, 32, 650

    key = jax.random.PRNGKey(0)
    k0, k1, k2, k3, k4, k5, k6, kx = jax.random.split(key, 8)

    # ExULayer(S, S): weight ~ trunc_normal(mean=4, std=0.5), bias ~ trunc_normal(std=0.5)
    w0 = _trunc_normal(k0, (S, S), mean=4.0, std=0.5)
    b0 = _trunc_normal(k1, (1, S), std=0.5)
    # ReLULayer(S, H1)
    w1 = _xavier_uniform(k2, (S, H1))
    b1 = _trunc_normal(k3, (1, S), std=0.5)
    # ReLULayer(H1, H2)
    w2 = _xavier_uniform(k4, (H1, H2))
    b2 = _trunc_normal(k5, (1, H1), std=0.5)
    # Linear(H2, 1, bias=False): torch weight is (1, H2); kernel uses its transpose
    wlin = _xavier_uniform(k6, (1, H2)).T                      # (H2, 1)

    # per-feature input: (B,) unsqueezed to (B, 1), as the module does
    x = jax.random.normal(kx, (B, 1), jnp.float32)

    out = feature_nn(x, b0, w0, b1, w1, b2, w2, wlin, batch_tile=256)
    out = jax.block_until_ready(out)

    ref = jnp.asarray(_reference_f64(x, b0, w0, b1, w1, b2, w2, wlin), jnp.float32)
    assert out.shape == (B, 1)
    # Tolerance covers f32 reassociation from the (mathematically exact) ExU rank-1
    # rewrite and bias folding near the clip boundaries; any real bug is O(1) off.
    max_err = float(jnp.max(jnp.abs(out - ref)))
    assert jnp.allclose(out, ref, atol=1e-2, rtol=1e-2), f"max_abs_err={max_err}"

    print("KERNEL_OK")
</pallas_src>

<mosaic_0001>
module attributes {stable_mosaic.version = 11 : i64} {
  func.func @feature_nn_kernel(%arg0: i32, %arg1: memref<1x256xf32, #tpu.memory_space<vmem>>, %arg2: memref<32x1xf32, #tpu.memory_space<vmem>>, %arg3: memref<32x1xf32, #tpu.memory_space<vmem>>, %arg4: memref<64x32xf32, #tpu.memory_space<vmem>>, %arg5: memref<64x1xf32, #tpu.memory_space<vmem>>, %arg6: memref<32x64xf32, #tpu.memory_space<vmem>>, %arg7: memref<32x1xf32, #tpu.memory_space<vmem>>, %arg8: memref<32x1xf32, #tpu.memory_space<vmem>>, %arg9: memref<1x256xf32, #tpu.memory_space<vmem>>) attributes {dimension_semantics = [#tpu.dimension_semantics<parallel>], iteration_bounds = array<i64: 3>, scalar_prefetch = 0 : i64, scratch_operands = 0 : i64, tpu.core_type = #tpu.core_type<tc>, window_params = [{transform_indices = @transform_0, window_bounds = array<i64: 1, 256>}, {pipeline_mode = #tpu.pipeline_mode<synchronous>, transform_indices = @transform_1, window_bounds = array<i64: 32, 1>}, {pipeline_mode = #tpu.pipeline_mode<synchronous>, transform_indices = @transform_2, window_bounds = array<i64: 32, 1>}, {pipeline_mode = #tpu.pipeline_mode<synchronous>, transform_indices = @transform_3, window_bounds = array<i64: 64, 32>}, {pipeline_mode = #tpu.pipeline_mode<synchronous>, transform_indices = @transform_4, window_bounds = array<i64: 64, 1>}, {pipeline_mode = #tpu.pipeline_mode<synchronous>, transform_indices = @transform_5, window_bounds = array<i64: 32, 64>}, {pipeline_mode = #tpu.pipeline_mode<synchronous>, transform_indices = @transform_6, window_bounds = array<i64: 32, 1>}, {pipeline_mode = #tpu.pipeline_mode<synchronous>, transform_indices = @transform_7, window_bounds = array<i64: 32, 1>}, {transform_indices = @transform_8, window_bounds = array<i64: 1, 256>}]} {
    %c0 = arith.constant 0 : index
    %c0_0 = arith.constant 0 : index
    %0 = vector.load %arg1[%c0, %c0_0] : memref<1x256xf32, #tpu.memory_space<vmem>>, vector<1x256xf32>
    %c0_1 = arith.constant 0 : index
    %c0_2 = arith.constant 0 : index
    %1 = vector.load %arg2[%c0_1, %c0_2] : memref<32x1xf32, #tpu.memory_space<vmem>>, vector<32x1xf32>
    %2 = vector.broadcast %1 : vector<32x1xf32> to vector<32x256xf32>
    %3 = vector.broadcast %0 : vector<1x256xf32> to vector<32x256xf32>
    %4 = arith.mulf %2, %3 : vector<32x256xf32>
    %c0_3 = arith.constant 0 : index
    %c0_4 = arith.constant 0 : index
    %5 = vector.load %arg3[%c0_3, %c0_4] : memref<32x1xf32, #tpu.memory_space<vmem>>, vector<32x1xf32>
    %6 = vector.broadcast %5 : vector<32x1xf32> to vector<32x256xf32>
    %7 = arith.subf %4, %6 : vector<32x256xf32>
    %cst = arith.constant 0.000000e+00 : f32
    %cst_5 = arith.constant 1.000000e+00 : f32
    %8 = vector.broadcast %cst : f32 to vector<32x256xf32>
    %9 = arith.maximumf %8, %7 : vector<32x256xf32>
    %10 = vector.broadcast %cst_5 : f32 to vector<32x256xf32>
    %11 = arith.minimumf %10, %9 : vector<32x256xf32>
    %c0_6 = arith.constant 0 : index
    %c0_7 = arith.constant 0 : index
    %12 = vector.load %arg4[%c0_6, %c0_7] : memref<64x32xf32, #tpu.memory_space<vmem>>, vector<64x32xf32>
    %cst_8 = arith.constant dense<0.000000e+00> : vector<64x256xf32>
    %13 = tpu.matmul %12, %11, %cst_8 {dimension_numbers = #tpu.dot_dimension_numbers<[1], [0], [0], [1], [0, 0, 1, 1], [], []>} : vector<64x32xf32>, vector<32x256xf32>, vector<64x256xf32> -> vector<64x256xf32>
    %c0_9 = arith.constant 0 : index
    %c0_10 = arith.constant 0 : index
    %14 = vector.load %arg5[%c0_9, %c0_10] : memref<64x1xf32, #tpu.memory_space<vmem>>, vector<64x1xf32>
    %15 = vector.broadcast %14 : vector<64x1xf32> to vector<64x256xf32>
    %16 = arith.subf %13, %15 : vector<64x256xf32>
    %cst_11 = arith.constant 0.000000e+00 : f32
    %17 = vector.broadcast %cst_11 : f32 to vector<64x256xf32>
    %18 = arith.maximumf %16, %17 : vector<64x256xf32>
    %c0_12 = arith.constant 0 : index
    %c0_13 = arith.constant 0 : index
    %19 = vector.load %arg6[%c0_12, %c0_13] : memref<32x64xf32, #tpu.memory_space<vmem>>, vector<32x64xf32>
    %cst_14 = arith.constant dense<0.000000e+00> : vector<32x256xf32>
    %20 = tpu.matmul %19, %18, %cst_14 {dimension_numbers = #tpu.dot_dimension_numbers<[1], [0], [0], [1], [0, 0, 1, 1], [], []>} : vector<32x64xf32>, vector<64x256xf32>, vector<32x256xf32> -> vector<32x256xf32>
    %c0_15 = arith.constant 0 : index
    %c0_16 = arith.constant 0 : index
    %21 = vector.load %arg7[%c0_15, %c0_16] : memref<32x1xf32, #tpu.memory_space<vmem>>, vector<32x1xf32>
    %22 = vector.broadcast %21 : vector<32x1xf32> to vector<32x256xf32>
    %23 = arith.subf %20, %22 : vector<32x256xf32>
    %cst_17 = arith.constant 0.000000e+00 : f32
    %24 = vector.broadcast %cst_17 : f32 to vector<32x256xf32>
    %25 = arith.maximumf %23, %24 : vector<32x256xf32>
    %c0_18 = arith.constant 0 : index
    %c0_19 = arith.constant 0 : index
    %26 = vector.load %arg8[%c0_18, %c0_19] : memref<32x1xf32, #tpu.memory_space<vmem>>, vector<32x1xf32>
    %27 = vector.broadcast %26 : vector<32x1xf32> to vector<32x256xf32>
    %28 = arith.mulf %25, %27 : vector<32x256xf32>
    %cst_20 = arith.constant dense<0.000000e+00> : vector<256xf32>
    %29 = vector.multi_reduction <add>, %28, %cst_20 [0] : vector<32x256xf32> to vector<256xf32>
    %30 = vector.shape_cast %29 : vector<256xf32> to vector<1x256xf32>
    %c0_21 = arith.constant 0 : index
    %c0_22 = arith.constant 0 : index
    %31 = vector.load %arg9[%c0_21, %c0_22] : memref<1x256xf32, #tpu.memory_space<vmem>>, vector<1x256xf32>
    tpu.vector_store %arg9[%c0_21, %c0_22], %30 {strides = array<i32>} : memref<1x256xf32, #tpu.memory_space<vmem>>, vector<1x256xf32>,
    return
  }
  func.func @transform_0(%arg0: i32) -> (i32, i32) {
    %c0_i32 = arith.constant 0 : i32
    %c0_i32_0 = arith.constant 0 : i32
    return %c0_i32, %arg0 : i32, i32
  }
  func.func @transform_1(%arg0: i32) -> (i32, i32) {
    %c0_i32 = arith.constant 0 : i32
    %c0_i32_0 = arith.constant 0 : i32
    %c0_i32_1 = arith.constant 0 : i32
    return %c0_i32, %c0_i32_0 : i32, i32
  }
  func.func @transform_2(%arg0: i32) -> (i32, i32) {
    %c0_i32 = arith.constant 0 : i32
    %c0_i32_0 = arith.constant 0 : i32
    %c0_i32_1 = arith.constant 0 : i32
    return %c0_i32, %c0_i32_0 : i32, i32
  }
  func.func @transform_3(%arg0: i32) -> (i32, i32) {
    %c0_i32 = arith.constant 0 : i32
    %c0_i32_0 = arith.constant 0 : i32
    %c0_i32_1 = arith.constant 0 : i32
    return %c0_i32, %c0_i32_0 : i32, i32
  }
  func.func @transform_4(%arg0: i32) -> (i32, i32) {
    %c0_i32 = arith.constant 0 : i32
    %c0_i32_0 = arith.constant 0 : i32
    %c0_i32_1 = arith.constant 0 : i32
    return %c0_i32, %c0_i32_0 : i32, i32
  }
  func.func @transform_5(%arg0: i32) -> (i32, i32) {
    %c0_i32 = arith.constant 0 : i32
    %c0_i32_0 = arith.constant 0 : i32
    %c0_i32_1 = arith.constant 0 : i32
    return %c0_i32, %c0_i32_0 : i32, i32
  }
  func.func @transform_6(%arg0: i32) -> (i32, i32) {
    %c0_i32 = arith.constant 0 : i32
    %c0_i32_0 = arith.constant 0 : i32
    %c0_i32_1 = arith.constant 0 : i32
    return %c0_i32, %c0_i32_0 : i32, i32
  }
  func.func @transform_7(%arg0: i32) -> (i32, i32) {
    %c0_i32 = arith.constant 0 : i32
    %c0_i32_0 = arith.constant 0 : i32
    %c0_i32_1 = arith.constant 0 : i32
    return %c0_i32, %c0_i32_0 : i32, i32
  }
  func.func @transform_8(%arg0: i32) -> (i32, i32) {
    %c0_i32 = arith.constant 0 : i32
    %c0_i32_0 = arith.constant 0 : i32
    return %c0_i32, %arg0 : i32, i32
  }
}

</mosaic_0001>

<bundles_post_ra>
// kernel: tpu_custom_call.1
= control target key start
LH: loop header
LB: loop body
LE: loop exit
PB: predicated region body
PF: predicated region fallthrough
CT: control target
= control target key end

     0   :  { %13 = vsyncpa [#allocation3], 0  ;;  %s1238_s0 = inlined_call_operand.vmem [shape: f32[1,768], index: 0, kind: input, shape index: {}]   ;;  %s1239_s1 = inlined_call_operand.vmem [shape: f32[32,1], index: 1, kind: input, shape index: {}]   ;;  %s1240_s2 = inlined_call_operand.vmem [shape: f32[32,1], index: 2, kind: input, shape index: {}]   ;;  %s1241_s3 = inlined_call_operand.vmem [shape: f32[64,32], index: 3, kind: input, shape index: {}]   ;;  %s1242_s4 = inlined_call_operand.vmem [shape: f32[64,1], index: 4, kind: input, shape index: {}]   ;;  %s1243_s5 = inlined_call_operand.vmem [shape: f32[32,64], index: 5, kind: input, shape index: {}]   ;;  %s1244_s6 = inlined_call_operand.vmem [shape: f32[32,1], index: 6, kind: input, shape index: {}]   ;;  %s1245_s7 = inlined_call_operand.vmem [shape: f32[32,1], index: 7, kind: input, shape index: {}]   ;;  %s1246_s8 = inlined_call_operand.hbm [shape: f32[1,768], index: 8, kind: output, shape index: {}]  }
   0x1   :  { %15 = vsyncpa [#allocation3 + $0x1], 0  ;;  %s1020_s27 = smov 0   ;;  %s1022_s28 = smov 0  }
   0x2   :  { %s1024_s29 = smov 0   ;;  %s1026_s30 = smov 0  }
   0x3 LB: > { %s832_s9 = sadd.s32 4294967295, %s972_s30   ;;  %s833_s10 = sadd.s32 4294967294, %s972_s30   ;;  %s972_s30 = sphi %s1026_s30, %s1252_s30   ;;  %s968_s29 = sphi %s1024_s29, %s1251_s29   ;;  %s964_s28 = sphi %s1022_s28, %s1250_s28   ;;  %s960_s27 = sphi %s1020_s27, %s1249_s27  }
   0x4   : > { %s1043_s11 = sadd.s32 1, %s972_s30   ;;  %s201_s12 = sadd.s32 1, %s968_s29 }
   0x5   : > { %s198_s13 = ssub.s32 %s972_s30, %s1043_s11  ;;  %p211_p0 = scmp.ne.s32.totalorder %s968_s29, %s964_s28 }
   0x6   : > { %p199_p1 = scmp.eq.s32.totalorder %s198_s13, 0  ;;  %p212_p2 = scmp.eq.s32.totalorder %s832_s9, 2 }
   0x7   : > { %p217_p3 = scmp.ne.s32.totalorder %s964_s28, %s960_s27  ;;  %p218_p4 = scmp.eq.s32.totalorder %s833_s10, 2 }
   0x8   : > { %s1055_s14 = scalar_select %p199_p1, %s968_s29, %s201_s12  }
   0x9   : > { %p1057_p5 = por %p212_p2, %p211_p0  ;;  %p1061_p6 = por %p218_p4, %p217_p3 }
   0xa   : > { %p836_p7 = scmp.ge.s32.totalorder %s972_s30, 1  ;;  %p265_p8 = scmp.lt.s32.totalorder %s972_s30, 4 }
   0xc   : > { %p266_p9 = pnand %p836_p7, %p265_p8 }
   0xd   : > { %s1141_s26 = sshll.u32 (!%p266_p9), %s832_s9, 1  ;;  %s295_s13 = sand.u32 (!%p266_p9), 1, %s964_s28  }
   0xe   : > { %269 = sbr.rel (%p266_p9) target bundleno = 545 (0x221), region = 52  ;;  %p299_p10 = scmp.lt.s32.totalorder (!%p266_p9), %s1141_s26, 5 }
   0xf   : > { %s772_s19 = scalar_lea.hbm (!%p266_p9), %s1246_s8, %s1141_s26  ;;  %s762_s23 = scalar_lea.sflag (!%p266_p9), [#allocation3], %s295_s13 }
  0x10   : > { %s776_s22 = sshll.u32 (!%p266_p9), %s772_s19, 4  ;;  %s930_s12 = scalar_lea.hbm (!%p266_p9), %s1246_s8, 6  ;;  %s777_s22 = int_to_ptr.hbm [resolvable:$true] %s776_s22 }
  0x11   : > { %s924_s24 = sshra.s32 (!%p266_p9), %s777_s22, 4  ;;  %s925_s24 = int_to_ptr.hbm [resolvable:$true] %s924_s24 }
  0x12   : > { %p931_p0 = scmp.lt.s32.totalorder (!%p266_p9), %s925_s24, %s1246_s8 }
  0x13   : > { %v344_v0 = vld [vmem:[%s1240_s2 + $0x10] sm:$0xff]  ;;  %v345_v1 = vld [vmem:[%s1240_s2 + $0x18] sm:$0xff]  ;;  %v974_v3 = vmov 0   ;;  %v305_v4 = vld [vmem:[%s1239_s1] sm:$0xff]  ;;  %s300_s10 = scalar_select %p299_p10, %s1141_s26, 5  ;;  %vm398_vm0 = vcmask 261120  }
  0x14   : > { %v308_v2 = vld [vmem:[%s1239_s1 + $0x18] sm:$0xff]  ;;  %909 = vset.pattern.permute.xlu2 %v974_v3  ;;  %908 = vset.pattern.permute.xlu1 %v974_v3  ;;  %v307_v5 = vld [vmem:[%s1239_s1 + $0x10] sm:$0xff]  ;;  %v306_v6 = vld [vmem:[%s1239_s1 + $0x8] sm:$0xff]  ;;  %vm589_vm1 = vcmask 523264   ;;  %vm753_vm2 = vcmask 1040384   ;;  %s926_s26 = scalar_lea.hbm %s925_s24, 2 }
  0x15   : > { %907 = vset.pattern.permute.xlu0 %v974_v3  ;;  %358 = vperm.xlu2 %909, %v344_v0   ;;  %v512_v7 = vld [vmem:[%s1242_s4 + $0x38] sm:$0xff]  ;;  %v343_v8 = vld [vmem:[%s1240_s2 + $0x8] sm:$0xff]  ;;  %v342_v9 = vld [vmem:[%s1240_s2] sm:$0xff]  ;;  %s301_s17 = scalar_lea.vmem %s1238_s0, %s300_s10  ;;  %p927_p11 = scmp.ne.s32.totalorder %s925_s24, %s926_s26 }
  0x16   : > { %363 = vperm.xlu1 %908, %v345_v1   ;;  %326 = vperm.xlu0 %907, %v308_v2   ;;  %v509_v10 = vld [vmem:[%s1242_s4 + $0x20] sm:$0xff]  ;;  %v511_v11 = vld [vmem:[%s1242_s4 + $0x30] sm:$0xff]  ;;  %v510_v12 = vld [vmem:[%s1242_s4 + $0x28] sm:$0xff]  ;;  %p932_p1 = scmp.lt.s32.totalorder %s930_s12, %s926_s26 }
  0x17   : > { %v506_v13 = vld [vmem:[%s1242_s4 + $0x8] sm:$0xff]  ;;  %v508_v14 = vld [vmem:[%s1242_s4 + $0x18] sm:$0xff]  ;;  %v507_v15 = vld [vmem:[%s1242_s4 + $0x10] sm:$0xff]  ;;  %p928_p12 = pnand %p927_p11, %p1057_p5 }
  0x18   : > { %v661_v16 = vld [vmem:[%s1244_s6 + $0x8] sm:$0xff]  ;;  %v505_v17 = vld [vmem:[%s1242_s4] sm:$0xff]  ;;  %v662_v20 = vld [vmem:[%s1244_s6 + $0x10] sm:$0xff]  ;;  %p933_p2 = por %p932_p1, %p931_p0 }
  0x19   : > { %v660_v18 = vld [vmem:[%s1244_s6] sm:$0xff]  ;;  %v663_v21 = vld [vmem:[%s1244_s6 + $0x18] sm:$0xff]  ;;  %v701_v23 = vld [vmem:[%s1245_s7 + $0x8] sm:$0xff]  ;;  %p929_p13 = pneg %p928_p12 }
  0x1a   : > { %v700_v19 = vld [vmem:[%s1245_s7] sm:$0xff]  ;;  %v703_v22 = vld [vmem:[%s1245_s7 + $0x18] sm:$0xff]  ;;  %v702_v24 = vld [vmem:[%s1245_s7 + $0x10] sm:$0xff] }
  0x1b   : > { %v304_v25 = vld [vmem:[%s301_s17] sm:$0x3]  ;;  %s837_s17 = sshll.u32 %s295_s13, 1  ;;  %p934_p3 = pnand %p933_p2, %p929_p13 }
  0x1c   : > { %v330_v26 = vperm.slane %v304_v25, 0  ;;  %v331_v27 = vperm.slane %v304_v25, 1  ;;  %s297_s20 = scalar_lea.vmem [#allocation2], %s837_s17 }
  0x1d   : > { %311 = vperm.xlu2 %909, %v305_v4   ;;  %v390_v4 = vld [vmem:[%s1241_s3] sm:$0xff]  ;;  %s774_s21 = sshll.u32 %s297_s20, 4  ;;  %s775_s21 = int_to_ptr.vmem [resolvable:$true] %s774_s21 }
  0x1e   : > { %321 = vperm.xlu0 %907, %v307_v5   ;;  %316 = vperm.xlu1 %908, %v306_v6   ;;  %v391_v5 = vld [vmem:[%s1241_s3 + $0x8] sm:$0xff]  ;;  %v392_v6 = vld [vmem:[%s1241_s3 + $0x10] sm:$0xff] }
  0x25   : > { %550 = vperm.xlu2 %909, %v512_v7   ;;  %v393_v7 = vld [vmem:[%s1241_s3 + $0x18] sm:$0xff] }
  0x26   : > { %353 = vperm.xlu0 %907, %v343_v8   ;;  %348 = vperm.xlu1 %908, %v342_v9   ;;  %v394_v8 = vld [vmem:[%s1241_s3 + $0x20] sm:$0xff]  ;;  %v395_v9 = vld [vmem:[%s1241_s3 + $0x28] sm:$0xff] }
  0x2d   : > { %535 = vperm.xlu2 %909, %v509_v10   ;;  %v396_v10 = vld [vmem:[%s1241_s3 + $0x30] sm:$0xff] }
  0x2e   : > { %545 = vperm.xlu0 %907, %v511_v11   ;;  %540 = vperm.xlu1 %908, %v510_v12   ;;  %v397_v11 = vld [vmem:[%s1241_s3 + $0x38] sm:$0xff] }
  0x35   : > { %520 = vperm.xlu2 %909, %v506_v13  }
  0x36   : > { %530 = vperm.xlu0 %907, %v508_v14   ;;  %525 = vperm.xlu1 %908, %v507_v15  }
  0x3d   : > { %671 = vperm.xlu2 %909, %v661_v16  }
  0x3e   : > { %515 = vperm.xlu0 %907, %v505_v17   ;;  %666 = vperm.xlu1 %908, %v660_v18  }
  0x45   : > { %706 = vperm.xlu2 %909, %v700_v19  }
  0x46   : > { %676 = vperm.xlu0 %907, %v662_v20   ;;  %681 = vperm.xlu1 %908, %v663_v21  }
  0x4d   : > { %721 = vperm.xlu2 %909, %v703_v22  }
  0x4e   : > { %711 = vperm.xlu0 %907, %v701_v23   ;;  %716 = vperm.xlu1 %908, %v702_v24  }
  0x6f   : > { %v359_v32 = vpop.permute.xlu2 %358 }
  0x77   : > { %v312_v45 = vpop.permute.xlu2 %311 }
  0x78   : > { %v334_v48 = vmul.f32 %v330_v26, %v312_v45  ;;  %v335_v49 = vmul.f32 %v331_v27, %v312_v45 }
  0x7f   : > { %v551_v24 = vpop.permute.xlu2 %550 }
  0x88   : > { %v364_v28 = vpop.permute.xlu1 %363  ;;  %v327_v29 = vpop.permute.xlu0 %326 }
  0x89   : > { %v340_v30 = vmul.f32 %v330_v26, %v327_v29  ;;  %v341_v31 = vmul.f32 %v331_v27, %v327_v29  ;;  %v536_v29 = vpop.permute.xlu2 %535 }
  0x8b   : > { %v372_v33 = vsub.f32 %v340_v30, %v364_v28  ;;  %v373_v34 = vsub.f32 %v341_v31, %v364_v28 }
  0x8d   : > { %v380_v35 = vmax.f32 %v372_v33, 0.0  ;;  %v381_v36 = vmax.f32 %v373_v34, 0.0 }
  0x8f   : > { %v388_v37 = vmin.f32 %v380_v35, 1.0  ;;  %v389_v38 = vmin.f32 %v381_v36, 1.0 }
  0x90   : > { %v322_v39 = vpop.permute.xlu0 %321  ;;  %v317_v40 = vpop.permute.xlu1 %316 }
  0x91   : > { %v338_v41 = vmul.f32 %v330_v26, %v322_v39  ;;  %v339_v42 = vmul.f32 %v331_v27, %v322_v39  ;;  %435 = vmatpush.msra.mxu0 %v388_v37  ;;  %476 = vmatpush.msra.mxu1 %v389_v38  ;;  %v336_v50 = vmul.f32 %v330_v26, %v317_v40 }
  0x92   : > { %v337_v51 = vmul.f32 %v331_v27, %v317_v40 }
  0x93   : > { %v370_v43 = vsub.f32 %v338_v41, %v359_v32  ;;  %v371_v44 = vsub.f32 %v339_v42, %v359_v32 }
  0x95   : > { %v378_v46 = vmax.f32 %v370_v43, 0.0  ;;  %v379_v47 = vmax.f32 %v371_v44, 0.0 }
  0x97   : > { %v386_v52 = vmin.f32 %v378_v46, 1.0  ;;  %v387_v53 = vmin.f32 %v379_v47, 1.0 }
  0x98   : > { %v354_v54 = vpop.permute.xlu0 %353  ;;  %v349_v55 = vpop.permute.xlu1 %348 }
  0x99   : > { %v368_v56 = vsub.f32 %v336_v50, %v354_v54  ;;  %v369_v57 = vsub.f32 %v337_v51, %v354_v54  ;;  %v366_v58 = vsub.f32 %v334_v48, %v349_v55  ;;  %v367_v59 = vsub.f32 %v335_v49, %v349_v55  ;;  %436 = vmatpush.msra.mxu0 %v386_v52  ;;  %v521_v54 = vpop.permute.xlu2 %520 }
  0x9a   : > { %477 = vmatpush.msra.mxu1 %v387_v53 }
  0x9b   : > { %v376_v60 = vmax.f32 %v368_v56, 0.0  ;;  %v377_v61 = vmax.f32 %v369_v57, 0.0  ;;  %v374_v62 = vmax.f32 %v366_v58, 0.0  ;;  %v375_v63 = vmax.f32 %v367_v59, 0.0 }
  0x9d   : > { %v384_v0 = vmin.f32 %v376_v60, 1.0  ;;  %v385_v1 = vmin.f32 %v377_v61, 1.0  ;;  %v382_v2 = vmin.f32 %v374_v62, 1.0  ;;  %v383_v3 = vmin.f32 %v375_v63, 1.0 }
  0x9f   : > { %437 = vmatpush.msra.mxu0 %v384_v0  ;;  %478 = vmatpush.msra.mxu1 %v385_v1 }
  0xa0   : > { %v546_v25 = vpop.permute.xlu0 %545  ;;  %v541_v28 = vpop.permute.xlu1 %540 }
  0xa1   : > { %438 = vmatpush.msra.mxu0 %v382_v2  ;;  %479 = vmatpush.msra.mxu1 %v383_v3 }
  0xa2   : > { %839 = vmatmul.msk.f32.vlgmr.msra.gmra.mxu0 %vm398_vm0, %v390_v4  ;;  %847 = vmatmul.msk.f32.vlgmr.msra.gmra.mxu1 %vm398_vm0, %v390_v4  ;;  %v585_v4 = vld [vmem:[%s1243_s5] sm:$0xff] }
  0xa8   : > { %v531_v36 = vpop.permute.xlu0 %530  ;;  %v526_v49 = vpop.permute.xlu1 %525 }
  0xaa   : > { %840 = vmatmul.msk.f32.gmra.mxu0 %vm398_vm0, %v391_v5  ;;  %848 = vmatmul.msk.f32.gmra.mxu1 %vm398_vm0, %v391_v5  ;;  %v586_v5 = vld [vmem:[%s1243_s5 + $0x8] sm:$0xff] }
  0xb0   : > { %v516_v59 = vpop.permute.xlu0 %515 }
  0xb2   : > { %841 = vmatmul.msk.f32.gmra.mxu0 %vm398_vm0, %v392_v6  ;;  %849 = vmatmul.msk.f32.gmra.mxu1 %vm398_vm0, %v392_v6  ;;  %v587_v6 = vld [vmem:[%s1243_s5 + $0x10] sm:$0xff] }
  0xba   : > { %842 = vmatmul.msk.f32.gmra.mxu0 %vm398_vm0, %v393_v7  ;;  %850 = vmatmul.msk.f32.gmra.mxu1 %vm398_vm0, %v393_v7  ;;  %v588_v7 = vld [vmem:[%s1243_s5 + $0x18] sm:$0xff] }
  0xc2   : > { %843 = vmatmul.msk.f32.gmra.mxu0 %vm398_vm0, %v394_v8  ;;  %851 = vmatmul.msk.f32.gmra.mxu1 %vm398_vm0, %v394_v8 }
  0xca   : > { %844 = vmatmul.msk.f32.gmra.mxu0 %vm398_vm0, %v395_v9  ;;  %852 = vmatmul.msk.f32.gmra.mxu1 %vm398_vm0, %v395_v9 }
  0xd2   : > { %845 = vmatmul.msk.f32.gmra.mxu0 %vm398_vm0, %v396_v10  ;;  %853 = vmatmul.msk.f32.gmra.mxu1 %vm398_vm0, %v396_v10  ;;  %v667_v10 = vpop.permute.xlu1 %666 }
  0xda   : > { %846 = vmatmul.msk.f32.gmra.mxu0 %vm398_vm0, %v397_v11  ;;  %854 = vmatmul.msk.f32.gmra.mxu1 %vm398_vm0, %v397_v11  ;;  %v672_v11 = vpop.permute.xlu2 %671 }
 0x11f   : > { %v1188_v12 = vpop.f32.mrf.mxu0  ;;  %v1190_v13 = vpop.f32.mrf.mxu1 }
 0x120   : > { %v553_v60 = vsub.f32 %v1188_v12, %v516_v59  ;;  %v554_v61 = vsub.f32 %v1190_v13, %v516_v59 }
 0x122   : > { %v569_v2 = vmax.f32 %v553_v60, 0.0  ;;  %v570_v3 = vmax.f32 %v554_v61, 0.0 }
 0x127   : > { %v443_v14 = vpop.f32.mrf.mxu0  ;;  %v484_v15 = vpop.f32.mrf.mxu1 }
 0x128   : > { %v555_v55 = vsub.f32 %v443_v14, %v521_v54  ;;  %v556_v56 = vsub.f32 %v484_v15, %v521_v54  ;;  %v677_v14 = vpop.permute.xlu0 %676  ;;  %v682_v15 = vpop.permute.xlu1 %681 }
 0x12a   : > { %v571_v0 = vmax.f32 %v555_v55, 0.0  ;;  %v572_v1 = vmax.f32 %v556_v56, 0.0 }
 0x12f   : > { %v446_v16 = vpop.f32.mrf.mxu0  ;;  %v487_v17 = vpop.f32.mrf.mxu1 }
 0x130   : > { %v557_v50 = vsub.f32 %v446_v16, %v526_v49  ;;  %v558_v51 = vsub.f32 %v487_v17, %v526_v49 }
 0x132   : > { %v573_v62 = vmax.f32 %v557_v50, 0.0  ;;  %v574_v63 = vmax.f32 %v558_v51, 0.0 }
 0x137   : > { %v449_v18 = vpop.f32.mrf.mxu0  ;;  %v490_v19 = vpop.f32.mrf.mxu1 }
 0x138   : > { %v559_v45 = vsub.f32 %v449_v18, %v531_v36  ;;  %v560_v46 = vsub.f32 %v490_v19, %v531_v36 }
 0x13a   : > { %v575_v57 = vmax.f32 %v559_v45, 0.0  ;;  %v576_v58 = vmax.f32 %v560_v46, 0.0 }
 0x13f   : > { %v452_v20 = vpop.f32.mrf.mxu0  ;;  %v493_v21 = vpop.f32.mrf.mxu1 }
 0x140   : > { %v561_v41 = vsub.f32 %v452_v20, %v536_v29  ;;  %v562_v42 = vsub.f32 %v493_v21, %v536_v29 }
 0x142   : > { %v577_v52 = vmax.f32 %v561_v41, 0.0  ;;  %v578_v53 = vmax.f32 %v562_v42, 0.0 }
 0x147   : > { %v455_v22 = vpop.f32.mrf.mxu0  ;;  %v496_v23 = vpop.f32.mrf.mxu1 }
 0x148   : > { %v563_v37 = vsub.f32 %v455_v22, %v541_v28  ;;  %v564_v38 = vsub.f32 %v496_v23, %v541_v28 }
 0x14a   : > { %v579_v47 = vmax.f32 %v563_v37, 0.0  ;;  %v580_v48 = vmax.f32 %v564_v38, 0.0 }
 0x14f   : > { %v458_v26 = vpop.f32.mrf.mxu0  ;;  %v499_v27 = vpop.f32.mrf.mxu1 }
 0x150   : > { %v565_v32 = vsub.f32 %v458_v26, %v546_v25  ;;  %v566_v33 = vsub.f32 %v499_v27, %v546_v25 }
 0x152   : > { %v581_v43 = vmax.f32 %v565_v32, 0.0  ;;  %v582_v44 = vmax.f32 %v566_v33, 0.0  ;;  %v717_v32 = vpop.permute.xlu1 %716 }
 0x157   : > { %v461_v30 = vpop.f32.mrf.mxu0  ;;  %v502_v31 = vpop.f32.mrf.mxu1 }
 0x158   : > { %v567_v34 = vsub.f32 %v461_v30, %v551_v24  ;;  %v568_v35 = vsub.f32 %v502_v31, %v551_v24  ;;  %v707_v24 = vpop.permute.xlu2 %706  ;;  %v712_v31 = vpop.permute.xlu0 %711 }
 0x15a   : > { %v583_v39 = vmax.f32 %v567_v34, 0.0  ;;  %v584_v40 = vmax.f32 %v568_v35, 0.0 }
 0x15c   : > { %610 = vmatpush.msra.mxu2 %v583_v39  ;;  %639 = vmatpush.msra.mxu3 %v584_v40 }
 0x15e   : > { %611 = vmatpush.msra.mxu2 %v581_v43  ;;  %640 = vmatpush.msra.mxu3 %v582_v44 }
 0x160   : > { %612 = vmatpush.msra.mxu2 %v579_v47  ;;  %641 = vmatpush.msra.mxu3 %v580_v48  ;;  %v722_v47 = vpop.permute.xlu2 %721 }
 0x162   : > { %613 = vmatpush.msra.mxu2 %v577_v52  ;;  %642 = vmatpush.msra.mxu3 %v578_v53 }
 0x164   : > { %614 = vmatpush.msra.mxu2 %v575_v57  ;;  %643 = vmatpush.msra.mxu3 %v576_v58 }
 0x166   : > { %615 = vmatpush.msra.mxu2 %v573_v62  ;;  %644 = vmatpush.msra.mxu3 %v574_v63 }
 0x168   : > { %616 = vmatpush.msra.mxu2 %v571_v0  ;;  %645 = vmatpush.msra.mxu3 %v572_v1  ;;  %v756_v0 = vlaneseq }
 0x16a   : > { %617 = vmatpush.msra.mxu2 %v569_v2  ;;  %646 = vmatpush.msra.mxu3 %v570_v3  ;;  %vm758_vm3 = vcmp.lt.s32.totalorder %v756_v0, 256 }
 0x16b   : > { %855 = vmatmul.msk.f32.vlgmr.msra.gmra.mxu2 %vm589_vm1, %v585_v4  ;;  %859 = vmatmul.msk.f32.vlgmr.msra.gmra.mxu3 %vm589_vm1, %v585_v4 }
 0x173   : > { %856 = vmatmul.msk.f32.gmra.mxu2 %vm589_vm1, %v586_v5  ;;  %860 = vmatmul.msk.f32.gmra.mxu3 %vm589_vm1, %v586_v5 }
 0x17b   : > { %857 = vmatmul.msk.f32.gmra.mxu2 %vm589_vm1, %v587_v6  ;;  %861 = vmatmul.msk.f32.gmra.mxu3 %vm589_vm1, %v587_v6 }
 0x183   : > { %858 = vmatmul.msk.f32.gmra.mxu2 %vm589_vm1, %v588_v7  ;;  %862 = vmatmul.msk.f32.gmra.mxu3 %vm589_vm1, %v588_v7 }
 0x1ee   : > { %v619_v8 = vpop.f32.mrf.mxu2  ;;  %v648_v9 = vpop.f32.mrf.mxu3 }
 0x1ef   : > { %v684_v18 = vsub.f32 %v619_v8, %v667_v10  ;;  %v685_v19 = vsub.f32 %v648_v9, %v667_v10 }
 0x1f1   : > { %v692_v27 = vmax.f32 %v684_v18, 0.0  ;;  %v693_v28 = vmax.f32 %v685_v19, 0.0 }
 0x1f3   : > { %v724_v35 = vmul.f32 %v707_v24, %v692_v27  ;;  %v725_v36 = vmul.f32 %v707_v24, %v693_v28 }
 0x1f6   : > { %v622_v12 = vpop.f32.mrf.mxu2  ;;  %v651_v13 = vpop.f32.mrf.mxu3 }
 0x1f7   : > { %v686_v16 = vsub.f32 %v622_v12, %v672_v11  ;;  %v687_v17 = vsub.f32 %v651_v13, %v672_v11 }
 0x1f9   : > { %v694_v25 = vmax.f32 %v686_v16, 0.0  ;;  %v695_v26 = vmax.f32 %v687_v17, 0.0 }
 0x1fb   : > { %v726_v33 = vmul.f32 %v712_v31, %v694_v25  ;;  %v727_v34 = vmul.f32 %v712_v31, %v695_v26 }
 0x1fd   : > { %v732_v43 = vadd.f32 %v726_v33, %v724_v35  ;;  %v741_v44 = vadd.f32 %v727_v34, %v725_v36 }
 0x1fe   : > { %v625_v20 = vpop.f32.mrf.mxu2  ;;  %v654_v21 = vpop.f32.mrf.mxu3 }
 0x1ff   : > { %v688_v22 = vsub.f32 %v625_v20, %v677_v14  ;;  %v689_v23 = vsub.f32 %v654_v21, %v677_v14 }
 0x201   : > { %v696_v29 = vmax.f32 %v688_v22, 0.0  ;;  %v697_v30 = vmax.f32 %v689_v23, 0.0 }
 0x203   : > { %v728_v39 = vmul.f32 %v717_v32, %v696_v29  ;;  %v729_v40 = vmul.f32 %v717_v32, %v697_v30 }
 0x205   : > { %v733_v48 = vadd.f32 %v732_v43, %v728_v39  ;;  %v742_v49 = vadd.f32 %v741_v44, %v729_v40 }
 0x206   : > { %v628_v37 = vpop.f32.mrf.mxu2  ;;  %v657_v38 = vpop.f32.mrf.mxu3 }
 0x207   : > { %v690_v41 = vsub.f32 %v628_v37, %v682_v15  ;;  %v691_v42 = vsub.f32 %v657_v38, %v682_v15 }
 0x209   : > { %v698_v45 = vmax.f32 %v690_v41, 0.0  ;;  %v699_v46 = vmax.f32 %v691_v42, 0.0 }
 0x20b   : > { %v730_v50 = vmul.f32 %v722_v47, %v698_v45  ;;  %v731_v51 = vmul.f32 %v722_v47, %v699_v46 }
 0x20d   : > { %v734_v52 = vadd.f32 %v733_v48, %v730_v50  ;;  %v743_v53 = vadd.f32 %v742_v49, %v731_v51 }
 0x20f   : > { %v735_v54 = vrot.slane %v734_v52, 4  ;;  %v744_v55 = vrot.slane %v743_v53, 4 }
 0x211   : > { %v736_v56 = vadd.f32 %v735_v54, %v734_v52  ;;  %v745_v57 = vadd.f32 %v744_v55, %v743_v53 }
 0x213   : > { %v737_v58 = vrot.slane %v736_v56, 2  ;;  %v746_v59 = vrot.slane %v745_v57, 2 }
 0x215   : > { %v738_v60 = vadd.f32 %v737_v58, %v736_v56  ;;  %v747_v61 = vadd.f32 %v746_v59, %v745_v57 }
 0x217   : > { %v739_v62 = vrot.slane %v738_v60, 1  ;;  %v748_v63 = vrot.slane %v747_v61, 1 }
 0x219   : > { %v749_v1 = vadd.f32 %v748_v63, %v747_v61  ;;  %v740_v2 = vadd.f32 %v739_v62, %v738_v60 }
 0x21b   : > { %v752_v3 = vrot.slane %v749_v1, 7 }
 0x21d   : > { %v754_v4 = vsel %vm753_vm2, %v740_v2, %v752_v3 }
 0x21e   : > { %760 = vst.msk [vmem:[%s297_s20] sm:$0x3] %vm758_vm3, %v754_v4 }
 0x21f   : > { %937 = shalt.err (!%p934_p3)
}
 0x220   : > { %867 = dma.vmem_to_hbm [thread:$0]  (%p1057_p5), %s775_s21, 32, %s777_s22, %s762_s23  }
 0x221 PF: > { %p873_p4 = scmp.ge.s32.totalorder %s972_s30, 2  ;;  %s788_s13 = sand.u32 1, %s960_s27  }
 0x222   : > { %s789_s18 = scalar_lea.sflag [#allocation3], %s788_s13 }
 0x223   : > { %p870_p7 = pnand %p873_p4, %p1061_p6 }
 0x225   : > { %p871_p8 = pneg %p870_p7 }
 0x227   : > { %955 = dma.done.wait (%p871_p8), %s789_s18, 32  }
 0x228   : > { %957 = vsyncadd (%p871_p8), %s789_s18, 4294967264  ;;  %p18_p9 = scmp.ge.s32.totalorder %s1043_s11, 5   ;;  %s1249_s27 = smov %s964_s28 }
 0x229   : > { %s1250_s28 = smov %s968_s29  ;;  %s1251_s29 = smov %s1055_s14 }
 0x22a   : > { %s1252_s30 = smov %s1043_s11  ;;  %20 = sbr.rel (!%p18_p9) target bundleno = 3 (0x3), region = 87 }
 0x22f   :  { %795 = vsyncpa [#allocation3], 1 }
 0x230   :  { %797 = vsyncpa [#allocation3 + $0x1], 1 }

</bundles_post_ra>
